<compile_context>
chip_gen: v5e
topology: v5e:2x2
jax: 0.10.0
libtpu: 0.0.40
codegen_flags: <defaults>
</compile_context>

<pallas_src>
import math
import functools

import jax
import jax.numpy as jnp
from jax.experimental import pallas as pl
from jax.experimental.pallas import tpu as pltpu


def _pe_add_kernel(x_ref, pe_ref, o_ref):
    # (TS, B, D) + (TS, 1, D) broadcast add; f32 compute, downcast on store.
    y = x_ref[...].astype(jnp.float32) + pe_ref[...].astype(jnp.float32)
    o_ref[...] = y.astype(o_ref.dtype)


def _pe_add_dropout_kernel(x_ref, pe_ref, bits_ref, o_ref, *, drop_thresh, scale):
    # Inverted dropout: keep with prob (1 - p), scale kept values by 1/(1 - p).
    y = x_ref[...].astype(jnp.float32) + pe_ref[...].astype(jnp.float32)
    keep = bits_ref[...] >= jnp.uint32(drop_thresh)
    o_ref[...] = jnp.where(
        keep, y * jnp.float32(scale), jnp.float32(0.0)
    ).astype(o_ref.dtype)


def make_positional_encoding_table(d_model, max_len=5000, dtype=jnp.float32):
    """Deterministic buffer setup; matches the PyTorch __init__ exactly."""
    position = jnp.arange(max_len, dtype=jnp.float32)[:, None]            # (L, 1)
    div_term = jnp.exp(
        jnp.arange(0, d_model, 2, dtype=jnp.float32)
        * (-math.log(10000.0) / d_model)
    )                                                                      # (D/2,)
    angles = position * div_term                                           # (L, D/2)
    pe = jnp.zeros((max_len, d_model), dtype=jnp.float32)
    pe = pe.at[:, 0::2].set(jnp.sin(angles))
    pe = pe.at[:, 1::2].set(jnp.cos(angles))
    # unsqueeze(0).transpose(0, 1) -> (max_len, 1, d_model)
    return pe[:, None, :].astype(dtype)


def positional_encoding_forward(x, pe, *, p=0.1, training=False, rng=None):
    """x: (S, B, D); pe: (max_len, 1, D).  Returns dropout(x + pe[:S])."""
    S, B, D = x.shape
    pe_s = pe[:S]                                   # (S, 1, D) glue slice

    do_dropout = bool(training) and p > 0.0
    if do_dropout and p >= 1.0:
        # torch.nn.Dropout(p=1) zeroes everything in training; avoid inf scale.
        return jnp.zeros_like(x)

    # Largest S-tile whose double-buffered streams (x, out[, bits]; pe is tiny)
    # fit a VMEM budget safe on every generation (v7x is the tightest).
    n_streams = 3 if do_dropout else 2
    bytes_per_row = B * D * 4                       # f32 compute width
    budget = 24 * 1024 * 1024
    ts = int(max(1, min(S, budget // (2 * n_streams * max(bytes_per_row, 1)))))
    grid = (pl.cdiv(S, ts),)

    x_spec = pl.BlockSpec((ts, B, D), lambda i: (i, 0, 0))
    pe_spec = pl.BlockSpec((ts, 1, D), lambda i: (i, 0, 0))
    out_spec = pl.BlockSpec((ts, B, D), lambda i: (i, 0, 0))

    compiler_params = pltpu.CompilerParams(
        dimension_semantics=("parallel",),          # v7x: shard S tiles over 2 TCs
        vmem_limit_bytes=32 * 1024 * 1024,
    )
    out_shape = jax.ShapeDtypeStruct((S, B, D), x.dtype)

    if not do_dropout:
        return pl.pallas_call(
            _pe_add_kernel,
            out_shape=out_shape,
            grid=grid,
            in_specs=[x_spec, pe_spec],
            out_specs=out_spec,
            compiler_params=compiler_params,
        )(x, pe_s)

    if rng is None:
        rng = jax.random.PRNGKey(0)
    bits = jax.random.bits(rng, (S, B, D), dtype=jnp.uint32)
    drop_thresh = min(int(round(p * float(2 ** 32))), 2 ** 32 - 1)
    kernel = functools.partial(
        _pe_add_dropout_kernel,
        drop_thresh=drop_thresh,
        scale=1.0 / (1.0 - p),
    )
    return pl.pallas_call(
        kernel,
        out_shape=out_shape,
        grid=grid,
        in_specs=[x_spec, pe_spec, x_spec],         # bits tiled exactly like x
        out_specs=out_spec,
        compiler_params=compiler_params,
    )(x, pe_s, bits)


if __name__ == "__main__":
    S, B, D = 8, 8, 128      # seq=8, batch=8, d_model=128 (lane/sublane dense)
    MAX_LEN = 64
    P_DROP = 0.1

    key = jax.random.PRNGKey(0)
    x_key, drop_key = jax.random.split(key)
    x = jax.random.normal(x_key, (S, B, D), dtype=jnp.float32)
    pe = make_positional_encoding_table(D, max_len=MAX_LEN)

    ref = x + pe[:S]         # pure-JAX reference of the PE add

    # Eval mode: dropout is identity -> must match the reference.
    out_eval = jax.block_until_ready(
        positional_encoding_forward(x, pe, p=P_DROP, training=False))
    assert out_eval.shape == (S, B, D)
    assert jnp.allclose(out_eval, ref, atol=1e-6), "eval-mode mismatch vs reference"

    # Training mode: inverted dropout -> each element is 0 or ref/(1-p).
    out_train = jax.block_until_ready(
        positional_encoding_forward(x, pe, p=P_DROP, training=True, rng=drop_key))
    assert out_train.shape == (S, B, D)
    kept = out_train != 0.0
    expected = jnp.where(kept, ref / (1.0 - P_DROP), 0.0)
    assert jnp.allclose(out_train, expected, atol=1e-5, rtol=1e-5), \
        "training-mode kept values not scaled by 1/(1-p)"
    drop_frac = float(1.0 - jnp.mean(kept.astype(jnp.float32)))
    assert 0.02 <= drop_frac <= 0.25, "dropout rate far from p=0.1"

    print("KERNEL_OK")
</pallas_src>

<mosaic_0001>
module attributes {stable_mosaic.version = 11 : i64} {
  func.func @_pe_add_kernel(%arg0: i32, %arg1: memref<8x8x128xf32, #tpu.memory_space<vmem>>, %arg2: memref<8x1x128xf32, #tpu.memory_space<vmem>>, %arg3: memref<8x8x128xf32, #tpu.memory_space<vmem>>) attributes {dimension_semantics = [#tpu.dimension_semantics<parallel>], iteration_bounds = array<i64: 1>, scalar_prefetch = 0 : i64, scratch_operands = 0 : i64, tpu.core_type = #tpu.core_type<tc>, window_params = [{transform_indices = @transform_0, window_bounds = array<i64: 8, 8, 128>}, {transform_indices = @transform_1, window_bounds = array<i64: 8, 1, 128>}, {transform_indices = @transform_2, window_bounds = array<i64: 8, 8, 128>}]} {
    %c0 = arith.constant 0 : index
    %c0_0 = arith.constant 0 : index
    %c0_1 = arith.constant 0 : index
    %0 = vector.load %arg1[%c0, %c0_0, %c0_1] : memref<8x8x128xf32, #tpu.memory_space<vmem>>, vector<8x8x128xf32>
    %c0_2 = arith.constant 0 : index
    %c0_3 = arith.constant 0 : index
    %c0_4 = arith.constant 0 : index
    %1 = vector.load %arg2[%c0_2, %c0_3, %c0_4] : memref<8x1x128xf32, #tpu.memory_space<vmem>>, vector<8x1x128xf32>
    %2 = vector.broadcast %1 : vector<8x1x128xf32> to vector<8x8x128xf32>
    %3 = arith.addf %0, %2 : vector<8x8x128xf32>
    %c0_5 = arith.constant 0 : index
    %c0_6 = arith.constant 0 : index
    %c0_7 = arith.constant 0 : index
    %4 = vector.load %arg3[%c0_5, %c0_6, %c0_7] : memref<8x8x128xf32, #tpu.memory_space<vmem>>, vector<8x8x128xf32>
    tpu.vector_store %arg3[%c0_5, %c0_6, %c0_7], %3 {strides = array<i32>} : memref<8x8x128xf32, #tpu.memory_space<vmem>>, vector<8x8x128xf32>,
    return
  }
  func.func @transform_0(%arg0: i32) -> (i32, i32, i32) {
    %c0_i32 = arith.constant 0 : i32
    %c0_i32_0 = arith.constant 0 : i32
    %c0_i32_1 = arith.constant 0 : i32
    return %arg0, %c0_i32, %c0_i32_0 : i32, i32, i32
  }
  func.func @transform_1(%arg0: i32) -> (i32, i32, i32) {
    %c0_i32 = arith.constant 0 : i32
    %c0_i32_0 = arith.constant 0 : i32
    %c0_i32_1 = arith.constant 0 : i32
    return %arg0, %c0_i32, %c0_i32_0 : i32, i32, i32
  }
  func.func @transform_2(%arg0: i32) -> (i32, i32, i32) {
    %c0_i32 = arith.constant 0 : i32
    %c0_i32_0 = arith.constant 0 : i32
    %c0_i32_1 = arith.constant 0 : i32
    return %arg0, %c0_i32, %c0_i32_0 : i32, i32, i32
  }
}

</mosaic_0001>

<bundles_post_ra>
// kernel: tpu_custom_call.1
= control target key start
LH: loop header
LB: loop body
LE: loop exit
PB: predicated region body
PF: predicated region fallthrough
CT: control target
= control target key end

     0   :  { %7 = vsyncpa [#allocation3], 0  ;;  %s253_s0 = inlined_call_operand.hbm [shape: f32[8,8,128], index: 0, kind: input, shape index: {}]   ;;  %s254_s1 = inlined_call_operand.hbm [shape: f32[8,1,128], index: 1, kind: input, shape index: {}]   ;;  %s255_s2 = inlined_call_operand.hbm [shape: f32[8,8,128], index: 2, kind: output, shape index: {}]  }
   0x1   :  { %8 = vsyncpa [#allocation6], 0 }
   0x2   :  { %9 = vsyncpa [#allocation4], 0  ;;  %s14_s11 = sshll.u32 %s253_s0, 4  ;;  %s213_s12 = smov [#allocation2]   ;;  %s15_s11 = int_to_ptr.hbm [resolvable:$true] %s14_s11 }
   0x3   :  { %s16_s13 = sshll.u32 %s213_s12, 4  ;;  %s27_s16 = sshll.u32 %s254_s1, 4  ;;  %s17_s13 = int_to_ptr.vmem [resolvable:$true] %s16_s13  ;;  %s28_s16 = int_to_ptr.hbm [resolvable:$true] %s27_s16 }
   0x4   :  { %s214_s17 = smov 128   ;;  %s215_s18 = smov 8  }
   0x5   :  { %22 = dma.hbm_to_vmem [thread:$0]  %s15_s11, 1024, %s17_s13, [#allocation3], %s214_s17, %s214_s17, %s215_s18  }
   0x6   :  { %s216_s19 = smov [#allocation5]   ;;  %s217_s21 = smov 16  }
   0x7   :  { %s29_s20 = sshll.u32 %s216_s19, 4  ;;  %s218_s0 = smov 1   ;;  %s30_s20 = int_to_ptr.vmem [resolvable:$true] %s29_s20 }
   0x8   :  { %35 = dma.hbm_to_vmem [thread:$0]  %s28_s16, 128, %s30_s20, [#allocation6], %s217_s21, %s217_s21, %s218_s0  }
   0x9   :  { %207 = dma.done.wait [#allocation3], 1024  }
   0xa   :  { %208 = vsyncadd [#allocation3], 4294966272 }
   0xb   :  { %209 = dma.done.wait [#allocation6], 128  }
   0xc   :  { %210 = vsyncadd [#allocation6], 4294967168  ;;  %v44_v0 = vld [vmem:[#allocation2] sm:$0xff]  ;;  %v45_v2 = vld [vmem:[#allocation2 + $0x8] sm:$0xff]  ;;  %s106_s23 = sshll.u32 %s255_s2, 4  ;;  %s219_s24 = smov [#allocation7]   ;;  %s107_s23 = int_to_ptr.hbm [resolvable:$true] %s106_s23 }
   0xd   :  { %v127_v1 = vld [vmem:[#allocation5] ss:$0 sm:$0xff]  ;;  %v128_v3 = vld [vmem:[#allocation5 + $0x1] ss:$0 sm:$0xff]  ;;  %v46_v5 = vld [vmem:[#allocation2 + $0x10] sm:$0xff]  ;;  %s247_s25 = sshll.u32 %s219_s24, 4  ;;  %s105_s25 = int_to_ptr.vmem [resolvable:$true] %s247_s25 }
   0xe   :  { %v84_v4 = vadd.f32 %v127_v1, %v44_v0  ;;  %v129_v6 = vld [vmem:[#allocation5 + $0x2] ss:$0 sm:$0xff]  ;;  %v85_v7 = vadd.f32 %v128_v3, %v45_v2  ;;  %v47_v8 = vld [vmem:[#allocation2 + $0x18] sm:$0xff]  ;;  %v130_v9 = vld [vmem:[#allocation5 + $0x3] ss:$0 sm:$0xff] }
   0xf   :  { %v86_v10 = vadd.f32 %v129_v6, %v46_v5  ;;  %v48_v11 = vld [vmem:[#allocation2 + $0x20] sm:$0xff]  ;;  %v87_v13 = vadd.f32 %v130_v9, %v47_v8  ;;  %v49_v14 = vld [vmem:[#allocation2 + $0x28] sm:$0xff]  ;;  %v50_v17 = vld [vmem:[#allocation2 + $0x30] sm:$0xff] }
  0x10   :  { %92 = vst [vmem:[#allocation7] sm:$0xff] %v84_v4  ;;  %v131_v12 = vld [vmem:[#allocation5 + $0x4] ss:$0 sm:$0xff]  ;;  %v132_v15 = vld [vmem:[#allocation5 + $0x5] ss:$0 sm:$0xff]  ;;  %v51_v20 = vld [vmem:[#allocation2 + $0x38] sm:$0xff] }
  0x11   :  { %93 = vst [vmem:[#allocation7 + $0x8] sm:$0xff] %v85_v7  ;;  %v88_v16 = vadd.f32 %v131_v12, %v48_v11  ;;  %v133_v18 = vld [vmem:[#allocation5 + $0x6] ss:$0 sm:$0xff]  ;;  %v89_v19 = vadd.f32 %v132_v15, %v49_v14  ;;  %v134_v21 = vld [vmem:[#allocation5 + $0x7] ss:$0 sm:$0xff] }
  0x12   :  { %94 = vst [vmem:[#allocation7 + $0x10] sm:$0xff] %v86_v10  ;;  %v90_v22 = vadd.f32 %v133_v18, %v50_v17  ;;  %v91_v23 = vadd.f32 %v134_v21, %v51_v20 }
  0x13   :  { %95 = vst [vmem:[#allocation7 + $0x18] sm:$0xff] %v87_v13 }
  0x14   :  { %96 = vst [vmem:[#allocation7 + $0x20] sm:$0xff] %v88_v16 }
  0x15   :  { %97 = vst [vmem:[#allocation7 + $0x28] sm:$0xff] %v89_v19 }
  0x16   :  { %98 = vst [vmem:[#allocation7 + $0x30] sm:$0xff] %v90_v22 }
  0x17   :  { %99 = vst [vmem:[#allocation7 + $0x38] sm:$0xff] %v91_v23 }
  0x18   :  { %112 = dma.vmem_to_hbm [thread:$0]  %s105_s25, 1024, %s107_s23, [#allocation4], %s214_s17, %s214_s17, %s215_s18  }
  0x19   :  { %211 = dma.done.wait [#allocation4], 1024  }
  0x1a   :  { %212 = vsyncadd [#allocation4], 4294966272 }
  0x1b   :  { %117 = vsyncpa [#allocation3], 1 }
  0x1c   :  { %118 = vsyncpa [#allocation6], 1 }
  0x1d   :  { %119 = vsyncpa [#allocation4], 1 }

</bundles_post_ra>
